<compile_context>
chip_gen: v7x
topology: tpu7x:2x2x1
jax: 0.10.0
libtpu: 0.0.40
codegen_flags: <defaults>
</compile_context>

<pallas_src>
import math

import jax
import jax.numpy as jnp
from jax.experimental import pallas as pl
from jax.experimental.pallas import tpu as pltpu


def _cdiv(a, b):
    return -(-a // b)


def _round_up(a, b):
    return _cdiv(a, b) * b


def _photon_counting_kernel(x_ref, o_ref):
    # P(>=1 photon) = 1 - exp(-|x|); abs/sub -> VPU, exp -> EUP (separate slot).
    # TODO(synk): gate native-bf16 compute on v6e/v7x if a bundle dump ever
    # shows the EUP slot (not HBM) binding; keep f32 for v5e portability.
    x = x_ref[...].astype(jnp.float32)
    o_ref[...] = (1.0 - jnp.exp(-jnp.abs(x))).astype(o_ref.dtype)


def _photon_ref_math(x, out_dtype):
    return (1.0 - jnp.exp(-jnp.abs(x.astype(jnp.float32)))).astype(out_dtype)


def photon_counting_p(x):
    """Pallas implementation of PhotonCountingP.forward (elementwise, any shape)."""
    orig_shape = x.shape
    dtype = x.dtype
    if dtype not in (jnp.float32, jnp.bfloat16, jnp.float16):
        # Integer / f64 inputs: compute (and return) in float32.
        x = x.astype(jnp.float32)
        dtype = jnp.float32

    total = math.prod(orig_shape)
    if total == 0:
        return x  # empty tensor

    itemsize = jnp.dtype(dtype).itemsize
    sub = 8 if itemsize == 4 else 16  # sublane tile: f32 -> 8, bf16/f16 -> 16

    xf = x.reshape(-1)

    # --- choose lane width ---------------------------------------------------
    # Prefer a lane width whose (lane * sub) chunk divides `total` exactly so the
    # whole tensor goes through the kernel as a pure (zero-copy) reshape.
    lane = None
    for cand in (512, 256, 128):
        if total >= cand * sub and total % (cand * sub) == 0:
            lane = cand
            break
    if lane is None:
        for cand in (512, 256, 128):
            if total >= cand * sub:
                lane = cand
                break
    if lane is None:
        # Tiny input (< one (sub, 128) tile): plain JAX, not worth a kernel.
        return _photon_ref_math(xf, dtype).reshape(orig_shape)

    chunk = lane * sub
    aligned_total = (total // chunk) * chunk
    rem = total - aligned_total  # < chunk elements

    # --- main (aligned) part: lane-dense slab via reshape --------------------
    x_main = xf if rem == 0 else xf[:aligned_total]
    rows = aligned_total // lane  # multiple of `sub`
    x2d = x_main.reshape(rows, lane)

    # Block sizing: target ~4 MiB per buffer (2 bufs x (in+out) ~= 16 MiB VMEM),
    # but guarantee >= 2 (and an even number of) grid steps when possible so the
    # "parallel" grid axis can split work across v7x's two TensorCores.
    target_block_rows = max(sub, ((4 << 20) // (lane * itemsize)) // sub * sub)
    n_blocks = _cdiv(rows, target_block_rows)
    if rows >= 2 * sub:
        n_blocks = max(n_blocks, 2)
        if n_blocks % 2:
            n_blocks += 1
    block_rows = _round_up(_cdiv(rows, n_blocks), sub)
    grid = (_cdiv(rows, block_rows),)

    block_bytes = block_rows * lane * itemsize
    cost = pl.CostEstimate(
        flops=2 * aligned_total,
        transcendentals=aligned_total,
        bytes_accessed=2 * aligned_total * itemsize,
    )

    out2d = pl.pallas_call(
        _photon_counting_kernel,
        out_shape=jax.ShapeDtypeStruct((rows, lane), dtype),
        grid_spec=pltpu.PrefetchScalarGridSpec(
            num_scalar_prefetch=0,
            grid=grid,
            in_specs=[pl.BlockSpec((block_rows, lane), lambda i: (i, 0))],
            out_specs=pl.BlockSpec((block_rows, lane), lambda i: (i, 0)),
        ),
        compiler_params=pltpu.CompilerParams(
            dimension_semantics=("parallel",),
            vmem_limit_bytes=max(32 * 1024 * 1024, 6 * block_bytes),
        ),
        cost_estimate=cost,
    )(x2d)

    if rem == 0:
        # Pure reshape back to the original shape: no extra HBM passes.
        return out2d.reshape(orig_shape)

    # --- tiny misaligned tail (< lane*sub elements): plain-JAX epilogue ------
    tail_out = _photon_ref_math(xf[aligned_total:], dtype)
    return jnp.concatenate([out2d.reshape(-1), tail_out]).reshape(orig_shape)


if __name__ == "__main__":
    key = jax.random.PRNGKey(0)
    k1, k2 = jax.random.split(key)

    # Small NCHW input consistent with the module's forward (aligned path).
    x = jax.random.normal(k1, (2, 4, 16, 16), dtype=jnp.float32)
    y = photon_counting_p(x)
    jax.block_until_ready(y)
    y_ref = 1.0 - jnp.exp(-jnp.abs(x))
    assert y.shape == x.shape and y.dtype == x.dtype
    assert jnp.allclose(y, y_ref, atol=1e-6, rtol=1e-6)

    # Misaligned shape exercises the aligned-prefix + tiny-epilogue path.
    x2 = jax.random.normal(k2, (2, 4, 16, 18), dtype=jnp.float32)
    y2 = photon_counting_p(x2)
    jax.block_until_ready(y2)
    y2_ref = 1.0 - jnp.exp(-jnp.abs(x2))
    assert y2.shape == x2.shape and y2.dtype == x2.dtype
    assert jnp.allclose(y2, y2_ref, atol=1e-6, rtol=1e-6)

    print("KERNEL_OK")
</pallas_src>

<mosaic_0001>
module attributes {stable_mosaic.version = 11 : i64} {
  func.func @_photon_counting_kernel(%arg0: i32, %arg1: memref<8x256xf32, #tpu.memory_space<vmem>>, %arg2: memref<8x256xf32, #tpu.memory_space<vmem>>) attributes {dimension_semantics = [#tpu.dimension_semantics<parallel>], iteration_bounds = array<i64: 1>, scalar_prefetch = 0 : i64, scratch_operands = 0 : i64, tpu.core_type = #tpu.core_type<tc>, window_params = [{transform_indices = @transform_0, window_bounds = array<i64: 8, 256>}, {transform_indices = @transform_1, window_bounds = array<i64: 8, 256>}]} {
    %c0 = arith.constant 0 : index
    %c0_0 = arith.constant 0 : index
    %0 = vector.load %arg1[%c0, %c0_0] : memref<8x256xf32, #tpu.memory_space<vmem>>, vector<8x256xf32>
    %1 = math.absf %0 : vector<8x256xf32>
    %cst = arith.constant 0.000000e+00 : f32
    %2 = vector.broadcast %cst : f32 to vector<8x256xf32>
    %3 = arith.subf %2, %1 : vector<8x256xf32>
    %4 = math.exp %3 : vector<8x256xf32>
    %cst_1 = arith.constant 1.000000e+00 : f32
    %5 = vector.broadcast %cst_1 : f32 to vector<8x256xf32>
    %6 = arith.subf %5, %4 : vector<8x256xf32>
    %c0_2 = arith.constant 0 : index
    %c0_3 = arith.constant 0 : index
    %7 = vector.load %arg2[%c0_2, %c0_3] : memref<8x256xf32, #tpu.memory_space<vmem>>, vector<8x256xf32>
    tpu.vector_store %arg2[%c0_2, %c0_3], %6 {strides = array<i32>} : memref<8x256xf32, #tpu.memory_space<vmem>>, vector<8x256xf32>,
    return
  }
  func.func @transform_0(%arg0: i32) -> (i32, i32) {
    %c0_i32 = arith.constant 0 : i32
    %c0_i32_0 = arith.constant 0 : i32
    return %arg0, %c0_i32 : i32, i32
  }
  func.func @transform_1(%arg0: i32) -> (i32, i32) {
    %c0_i32 = arith.constant 0 : i32
    %c0_i32_0 = arith.constant 0 : i32
    return %arg0, %c0_i32 : i32, i32
  }
}

</mosaic_0001>

<bundles_post_ra>
// kernel: tpu_custom_call.1
= control target key start
LH: loop header
LB: loop body
LE: loop exit
PB: predicated region body
PF: predicated region fallthrough
CT: control target
= control target key end

     0   :  { %6 = vsyncpa [#allocation3], 0  ;;  %s140_s0 = inlined_call_operand.hbm [shape: f32[8,256], index: 0, kind: input, shape index: {}]   ;;  %s141_s1 = inlined_call_operand.hbm [shape: f32[8,256], index: 1, kind: output, shape index: {}]  }
   0x1   :  { %7 = vsyncpa [#allocation4], 0  ;;  %s104_s6 = smov [#allocation2]   ;;  %s56_s10 = scalar_lea.hbm %s140_s0, 256 }
   0x2   :  { %s14_s7 = sshll.u32 %s104_s6, 4  ;;  %p57_p0 = scmp.ne.s32.totalorder %s140_s0, %s56_s10  ;;  %s15_s7 = int_to_ptr.vmem [resolvable:$true] %s14_s7 }
   0x3   :  { %p60_p1 = scmp.lt.u32.totalorder %s56_s10, %s140_s0 }
   0x5   :  { %p62_p2 = pnand %p60_p1, %p57_p0 }
   0x7   :  { %65 = shalt.err (!%p62_p2)
}
   0x8   :  { %s66_s15 = scalar_lea.vmem %s15_s7, 256  ;;  %p71_p4 = scmp.lt.s32.totalorder %s15_s7, %s15_s7 }
   0x9   :  { %p67_p3 = scmp.ne.s32.totalorder %s15_s7, %s66_s15  ;;  %p72_p5 = scmp.lt.s32.totalorder %s66_s15, %s66_s15 }
   0xb   :  { %p73_p6 = por %p72_p5, %p71_p4 }
   0xd   :  { %p74_p7 = pnand %p73_p6, %p67_p3 }
   0xf   :  { %77 = shalt.err (!%p74_p7)
}
  0x10   :  { %17 = dma.hbm_to_vmem [thread:$0]  %s140_s0, 256, %s15_s7, [#allocation3]  }
  0x11   :  { %100 = dma.done.wait [#allocation3], 256  }
  0x12   :  { %101 = vsyncadd [#allocation3], 4294967040  ;;  %v21_v0 = vld [vmem:[#allocation2] sm:$0xff]  ;;  %v22_v1 = vld [vmem:[#allocation2 + $0x8] sm:$0xff]  ;;  %s105_s18 = smov [#allocation5]  }
  0x13   :  { %v23_v2 = vand.u32 2147483647, %v21_v0  ;;  %v24_v3 = vand.u32 2147483647, %v22_v1  ;;  %s41_s19 = sshll.u32 %s105_s18, 4  ;;  %s42_s19 = int_to_ptr.vmem [resolvable:$true] %s41_s19 }
  0x14   :  { %s78_s0 = scalar_lea.vmem %s42_s19, 256  ;;  %p83_p9 = scmp.lt.s32.totalorder %s42_s19, %s42_s19 }
  0x15   :  { %v25_v4 = vsub.f32 0.0, %v23_v2  ;;  %v26_v5 = vsub.f32 0.0, %v24_v3  ;;  %p79_p8 = scmp.ne.s32.totalorder %s42_s19, %s78_s0  ;;  %p84_p10 = scmp.lt.s32.totalorder %s78_s0, %s78_s0 }
  0x17   :  { %v27_v6 = vmul.f32 1.442695, %v25_v4  ;;  %v29_v7 = vmul.f32 1.442695, %v26_v5  ;;  %p85_p11 = por %p84_p10, %p83_p9 }
  0x19   :  { %52 = vpow2.f32 %v27_v6  ;;  %p86_p12 = pnand %p85_p11, %p79_p8 }
  0x1a   :  { %54 = vpow2.f32 %v29_v7 }
  0x23   :  { %v53_v8 = vpop.eup %52 }
  0x24   :  { %v55_v9 = vpop.eup %54  ;;  %v31_v10 = vsub.f32 1.0, %v53_v8 }
  0x25   :  { %v32_v11 = vsub.f32 1.0, %v55_v9 }
  0x26   :  { %33 = vst [vmem:[#allocation5] sm:$0xff] %v31_v10 }
  0x27   :  { %34 = vst [vmem:[#allocation5 + $0x8] sm:$0xff] %v32_v11 }
  0x28   :  { %89 = shalt.err (!%p86_p12)
}
  0x29   :  { %s90_s22 = scalar_lea.hbm %s141_s1, 256 }
  0x2a   :  { %p91_p13 = scmp.ne.s32.totalorder %s141_s1, %s90_s22  ;;  %p94_p0 = scmp.lt.u32.totalorder %s90_s22, %s141_s1 }
  0x2c   :  { %p96_p1 = pnand %p94_p0, %p91_p13 }
  0x2e   :  { %99 = shalt.err (!%p96_p1)
}
  0x2f   :  { %44 = dma.vmem_to_hbm [thread:$0]  %s42_s19, 256, %s141_s1, [#allocation4]  }
  0x30   :  { %102 = dma.done.wait [#allocation4], 256  }
  0x31   :  { %103 = vsyncadd [#allocation4], 4294967040 }
  0x32   :  { %48 = vsyncpa [#allocation3], 1 }
  0x33   :  { %49 = vsyncpa [#allocation4], 1 }

</bundles_post_ra>
